<compile_context>
chip_gen: v5e
topology: v5e:2x2
jax: 0.10.0
libtpu: 0.0.40
codegen_flags: <defaults>
</compile_context>

<pallas_src>
import functools

import jax
import jax.numpy as jnp
from jax.experimental import pallas as pl
from jax.experimental.pallas import tpu as pltpu

LANE = 128      # lane width: feature / output dims are padded to a multiple of this
TILE_N = 256    # destination-node row-block size (multiple of 32, VMEM-safe on v7x)


def _round_up(x, m):
    return (x + m - 1) // m * m


def project_kernel(x_ref, w_ref, a2_ref, h_ref, hs_ref):
    """h = x @ W (bf16 MXU, f32 acc); hs = h @ [a_dst | a_src] (fused projections)."""
    h = jnp.dot(x_ref[...].astype(jnp.bfloat16), w_ref[...].astype(jnp.bfloat16),
                preferred_element_type=jnp.float32)                      # [T, F_pad]
    hs_ref[...] = jnp.dot(h, a2_ref[...], preferred_element_type=jnp.float32)  # [T, 2]
    h_ref[...] = h.astype(jnp.bfloat16)


def attention_kernel(adj_ref, d_ref, s_ref, h_ref, b_ref, o_ref, *, apply_relu):
    """Masked-softmax attention + aggregation for one destination-row block."""
    # e[i, j] = LeakyReLU_0.2(d_i + s_j)
    logits = d_ref[...] + s_ref[...]                        # [TILE_N, N_pad] (f32)
    logits = jnp.maximum(logits, 0.2 * logits)              # LeakyReLU(0.2)

    # Masked softmax over incoming neighbours (axis=-1 == source nodes j).
    mask = adj_ref[...].astype(jnp.float32) > 0.0           # int8 adjacency block
    logits = jnp.where(mask, logits, -1e30)
    m = jnp.max(logits, axis=-1, keepdims=True)
    p = jnp.exp(logits - m)                                 # masked entries underflow to 0
    denom = jnp.maximum(jnp.sum(p, axis=-1, keepdims=True), 1e-20)  # guard all-masked rows
    alpha = p * pl.reciprocal(denom, approx=True)           # EUP reciprocal, no VALU divide

    # Aggregate on the MXU (bf16 operands, f32 accumulate) + bias.
    out = jnp.dot(alpha.astype(jnp.bfloat16), h_ref[...],
                  preferred_element_type=jnp.float32) + b_ref[...]
    if apply_relu:
        out = jnp.maximum(out, 0.0)
    o_ref[...] = out


def gat_conv(x_p, adj_p, w, a_src, a_dst, bias, *, apply_relu=False):
    """One dense GATConv layer (heads=1) on row-padded inputs.

    x_p   : [N_pad, F_in_p] f32  (rows >= real N are zero / ignored)
    adj_p : [N_pad, N_pad] int8, adj_p[dst, src] = 1 (self-loops included)
    Returns [N_pad, F_out_pad] f32; valid data lives in [:N, :F_out].
    """
    n_pad, f_in = x_p.shape
    f_out = w.shape[1]
    f_pad = _round_up(f_out, LANE)          # lane-dense output columns
    tile_n = min(TILE_N, n_pad)
    n_blocks = n_pad // tile_n

    # Wrapper-side parameter padding (pure layout plumbing).
    w_p = jnp.zeros((f_in, f_pad), jnp.float32).at[:w.shape[0], :f_out].set(w)
    b_p = jnp.zeros((1, f_pad), jnp.float32).at[:, :f_out].set(bias.reshape(1, -1))
    # Fused attention projection: column 0 = a_dst, column 1 = a_src.
    a2 = jnp.zeros((f_pad, 2), jnp.float32)
    a2 = a2.at[:f_out, 0].set(a_dst.reshape(-1))
    a2 = a2.at[:f_out, 1].set(a_src.reshape(-1))

    # Pass 1: projection + fused attention scores, tiled over node rows.
    h, hs = pl.pallas_call(
        project_kernel,
        out_shape=(jax.ShapeDtypeStruct((n_pad, f_pad), jnp.bfloat16),
                   jax.ShapeDtypeStruct((n_pad, 2), jnp.float32)),
        grid=(n_blocks,),
        in_specs=[
            pl.BlockSpec((tile_n, f_in), lambda i: (i, 0)),
            pl.BlockSpec((f_in, f_pad), lambda i: (0, 0)),
            pl.BlockSpec((f_pad, 2), lambda i: (0, 0)),
        ],
        out_specs=(
            pl.BlockSpec((tile_n, f_pad), lambda i: (i, 0)),
            pl.BlockSpec((tile_n, 2), lambda i: (i, 0)),
        ),
        compiler_params=pltpu.CompilerParams(dimension_semantics=("parallel",)),
    )(x_p, w_p, a2)

    d = hs[:, 0:1]                      # [N_pad, 1]  destination scores (per row block)
    s = hs[:, 1:2].reshape(1, n_pad)    # [1, N_pad]  source scores (resident, full)

    # Pass 2: masked softmax + aggregation, tiled over destination-node row blocks.
    kernel = functools.partial(attention_kernel, apply_relu=apply_relu)
    out = pl.pallas_call(
        kernel,
        out_shape=jax.ShapeDtypeStruct((n_pad, f_pad), jnp.float32),
        grid=(n_blocks,),
        in_specs=[
            pl.BlockSpec((tile_n, n_pad), lambda i: (i, 0)),   # int8 adjacency row block
            pl.BlockSpec((tile_n, 1), lambda i: (i, 0)),       # d for this row block
            pl.BlockSpec((1, n_pad), lambda i: (0, 0)),        # s, full, stays resident
            pl.BlockSpec((n_pad, f_pad), lambda i: (0, 0)),    # h (bf16), full, resident
            pl.BlockSpec((1, f_pad), lambda i: (0, 0)),        # bias
        ],
        out_specs=pl.BlockSpec((tile_n, f_pad), lambda i: (i, 0)),
        compiler_params=pltpu.CompilerParams(dimension_semantics=("parallel",)),
    )(adj_p, d, s, h, b_p)
    return out


def gat_forward(x, edge_index, edge_attr, params):
    """Full GAT.forward: conv1 -> relu -> dropout(eval) -> conv2."""
    del edge_attr  # GATConv with edge_dim=None ignores edge_attr.
    n, f_in = x.shape
    num_classes = params["w2"].shape[1]

    # Row padding so the destination-node grid tiles evenly (lane-aligned).
    n_pad = _round_up(n, LANE)
    n_pad = _round_up(n_pad, min(TILE_N, n_pad))

    # Dense int8 adjacency: adj[dst, src] = 1, plus self-loops (PyG default).
    # TODO(synk): for genuinely large/sparse graphs, switch to an edge-list / CSR
    # kernel driven by PrefetchScalarGridSpec instead of this dense [N, N] form.
    src, dst = edge_index[0], edge_index[1]
    adj = jnp.zeros((n, n), jnp.int8).at[dst, src].set(1)
    adj = jnp.maximum(adj, jnp.eye(n, dtype=jnp.int8))
    adj_p = jnp.zeros((n_pad, n_pad), jnp.int8).at[:n, :n].set(adj)

    x_p = jnp.zeros((n_pad, f_in), jnp.float32).at[:n, :].set(x.astype(jnp.float32))

    h1 = gat_conv(x_p, adj_p, params["w1"], params["a_src1"], params["a_dst1"],
                  params["b1"], apply_relu=True)          # ReLU fused into layer 1
    # TODO(synk): F.dropout(p=0.5) implemented as identity (eval mode); training-mode
    # dropout would use pltpu.prng_seed / pltpu.prng_random_bits inside the kernel.
    out = gat_conv(h1, adj_p, params["w2"], params["a_src2"], params["a_dst2"],
                   params["b2"], apply_relu=False)
    return out[:n, :num_classes]


def init_params(key, num_features, hidden, num_classes):
    ks = jax.random.split(key, 8)
    scale = 0.1
    return {
        "w1":     scale * jax.random.normal(ks[0], (num_features, hidden), jnp.float32),
        "a_src1": scale * jax.random.normal(ks[1], (1, hidden), jnp.float32),
        "a_dst1": scale * jax.random.normal(ks[2], (hidden, 1), jnp.float32),
        "b1":     jnp.zeros((1, hidden), jnp.float32),
        "w2":     scale * jax.random.normal(ks[3], (hidden, num_classes), jnp.float32),
        "a_src2": scale * jax.random.normal(ks[4], (1, num_classes), jnp.float32),
        "a_dst2": scale * jax.random.normal(ks[5], (num_classes, 1), jnp.float32),
        "b2":     jnp.zeros((1, num_classes), jnp.float32),
    }


if __name__ == "__main__":
    key = jax.random.PRNGKey(0)
    k_x, k_e, k_attr, k_p = jax.random.split(key, 4)

    N = 8            # nodes
    F_IN = 16        # dataset.num_features
    HIDDEN = 32      # hidden_channels_1
    NUM_CLASSES = 10
    E = 16           # edges

    x = jax.random.normal(k_x, (N, F_IN), jnp.float32)
    edge_index = jax.random.randint(k_e, (2, E), 0, N, dtype=jnp.int32)
    edge_attr = jax.random.normal(k_attr, (E, 4), jnp.float32)  # unused by GATConv

    params = init_params(k_p, F_IN, HIDDEN, NUM_CLASSES)

    out = gat_forward(x, edge_index, edge_attr, params)
    out = jax.block_until_ready(out)
    assert out.shape == (N, NUM_CLASSES)
    assert jnp.all(jnp.isfinite(out))
    print("KERNEL_OK")
</pallas_src>

<mosaic_0001>
module attributes {stable_mosaic.version = 11 : i64} {
  func.func @project_kernel(%arg0: i32, %arg1: memref<128x16xf32, #tpu.memory_space<vmem>>, %arg2: memref<16x128xf32, #tpu.memory_space<vmem>>, %arg3: memref<128x2xf32, #tpu.memory_space<vmem>>, %arg4: memref<128x128xbf16, #tpu.memory_space<vmem>>, %arg5: memref<128x2xf32, #tpu.memory_space<vmem>>) attributes {dimension_semantics = [#tpu.dimension_semantics<parallel>], iteration_bounds = array<i64: 1>, scalar_prefetch = 0 : i64, scratch_operands = 0 : i64, tpu.core_type = #tpu.core_type<tc>, window_params = [{transform_indices = @transform_0, window_bounds = array<i64: 128, 16>}, {pipeline_mode = #tpu.pipeline_mode<synchronous>, transform_indices = @transform_1, window_bounds = array<i64: 16, 128>}, {pipeline_mode = #tpu.pipeline_mode<synchronous>, transform_indices = @transform_2, window_bounds = array<i64: 128, 2>}, {transform_indices = @transform_3, window_bounds = array<i64: 128, 128>}, {transform_indices = @transform_4, window_bounds = array<i64: 128, 2>}]} {
    %c0 = arith.constant 0 : index
    %c0_0 = arith.constant 0 : index
    %0 = vector.load %arg1[%c0, %c0_0] : memref<128x16xf32, #tpu.memory_space<vmem>>, vector<128x16xf32>
    %1 = arith.truncf %0 : vector<128x16xf32> to vector<128x16xbf16>
    %c0_1 = arith.constant 0 : index
    %c0_2 = arith.constant 0 : index
    %2 = vector.load %arg2[%c0_1, %c0_2] : memref<16x128xf32, #tpu.memory_space<vmem>>, vector<16x128xf32>
    %3 = arith.truncf %2 : vector<16x128xf32> to vector<16x128xbf16>
    %cst = arith.constant dense<0.000000e+00> : vector<128x128xf32>
    %4 = tpu.matmul %1, %3, %cst {dimension_numbers = #tpu.dot_dimension_numbers<[1], [0], [0], [1], [0, 0, 1, 1], [], []>} : vector<128x16xbf16>, vector<16x128xbf16>, vector<128x128xf32> -> vector<128x128xf32>
    %c0_3 = arith.constant 0 : index
    %c0_4 = arith.constant 0 : index
    %5 = vector.load %arg3[%c0_3, %c0_4] : memref<128x2xf32, #tpu.memory_space<vmem>>, vector<128x2xf32>
    %cst_5 = arith.constant dense<0.000000e+00> : vector<128x2xf32>
    %6 = tpu.matmul %4, %5, %cst_5 {dimension_numbers = #tpu.dot_dimension_numbers<[1], [0], [0], [1], [0, 0, 1, 1], [], []>} : vector<128x128xf32>, vector<128x2xf32>, vector<128x2xf32> -> vector<128x2xf32>
    %c0_6 = arith.constant 0 : index
    %c0_7 = arith.constant 0 : index
    %7 = vector.load %arg5[%c0_6, %c0_7] : memref<128x2xf32, #tpu.memory_space<vmem>>, vector<128x2xf32>
    tpu.vector_store %arg5[%c0_6, %c0_7], %6 {strides = array<i32>} : memref<128x2xf32, #tpu.memory_space<vmem>>, vector<128x2xf32>,
    %8 = arith.truncf %4 : vector<128x128xf32> to vector<128x128xbf16>
    %c0_8 = arith.constant 0 : index
    %c0_9 = arith.constant 0 : index
    %9 = vector.load %arg4[%c0_8, %c0_9] : memref<128x128xbf16, #tpu.memory_space<vmem>>, vector<128x128xbf16>
    tpu.vector_store %arg4[%c0_8, %c0_9], %8 {strides = array<i32>} : memref<128x128xbf16, #tpu.memory_space<vmem>>, vector<128x128xbf16>,
    return
  }
  func.func @transform_0(%arg0: i32) -> (i32, i32) {
    %c0_i32 = arith.constant 0 : i32
    %c0_i32_0 = arith.constant 0 : i32
    return %arg0, %c0_i32 : i32, i32
  }
  func.func @transform_1(%arg0: i32) -> (i32, i32) {
    %c0_i32 = arith.constant 0 : i32
    %c0_i32_0 = arith.constant 0 : i32
    %c0_i32_1 = arith.constant 0 : i32
    return %c0_i32, %c0_i32_0 : i32, i32
  }
  func.func @transform_2(%arg0: i32) -> (i32, i32) {
    %c0_i32 = arith.constant 0 : i32
    %c0_i32_0 = arith.constant 0 : i32
    %c0_i32_1 = arith.constant 0 : i32
    return %c0_i32, %c0_i32_0 : i32, i32
  }
  func.func @transform_3(%arg0: i32) -> (i32, i32) {
    %c0_i32 = arith.constant 0 : i32
    %c0_i32_0 = arith.constant 0 : i32
    return %arg0, %c0_i32 : i32, i32
  }
  func.func @transform_4(%arg0: i32) -> (i32, i32) {
    %c0_i32 = arith.constant 0 : i32
    %c0_i32_0 = arith.constant 0 : i32
    return %arg0, %c0_i32 : i32, i32
  }
}

</mosaic_0001>

<bundles_post_ra>
// kernel: tpu_custom_call.1
= control target key start
LH: loop header
LB: loop body
LE: loop exit
PB: predicated region body
PF: predicated region fallthrough
CT: control target
= control target key end

     0   :  { %s593_s0 = inlined_call_operand.vmem [shape: f32[128,16], index: 0, kind: input, shape index: {}]   ;;  %s594_s1 = inlined_call_operand.vmem [shape: f32[16,128], index: 1, kind: input, shape index: {}]   ;;  %s595_s2 = inlined_call_operand.vmem [shape: f32[128,2], index: 2, kind: input, shape index: {}]   ;;  %s596_s3 = inlined_call_operand.hbm [shape: bf16[128,128], index: 3, kind: output, shape index: {0}]   ;;  %s597_s4 = inlined_call_operand.vmem [shape: f32[128,2], index: 4, kind: output, shape index: {1}]  }
   0x1   :  { %v42_v0 = vld [vmem:[%s594_s1] sm:$0xff]  ;;  %v43_v1 = vld [vmem:[%s594_s1 + $0x8] sm:$0xff] }
   0x2   :  { %v18_v2 = vld [vmem:[%s593_s0] sm:$0xff]  ;;  %v44_v3 = vpack.c.bf16 %v43_v1, %v42_v0  ;;  %v19_v4 = vld [vmem:[%s593_s0 + $0x8] sm:$0xff] }
   0x3   :  { %v34_v5 = vpack.c.bf16 %v19_v4, %v18_v2 }
   0x4   :  { %10 = vsyncpa [#allocation3], 0  ;;  %77 = vmatpush.bf16.msra.mxu0 %v44_v3  ;;  %vm45_vm0 = vcmask 130048   ;;  %326 = vmatpush.bf16.msra.mxu3 %v44_v3  ;;  %v20_v6 = vld [vmem:[%s593_s0 + $0x10] sm:$0xff]  ;;  %v21_v7 = vld [vmem:[%s593_s0 + $0x18] sm:$0xff]  ;;  %s255_s30 = sshll.u32 %s596_s3, 4  ;;  %s256_s30 = int_to_ptr.hbm [resolvable:$true] %s255_s30 }
   0x5   :  { %v35_v8 = vpack.c.bf16 %v21_v7, %v20_v6  ;;  %v28_v9 = vld [vmem:[%s593_s0 + $0x50] sm:$0xff]  ;;  %v29_v10 = vld [vmem:[%s593_s0 + $0x58] sm:$0xff]  ;;  %v22_v12 = vld [vmem:[%s593_s0 + $0x20] sm:$0xff]  ;;  %s389_s5 = smov 64   ;;  %s390_s6 = smov 4   ;;  %vm200_vm1 = vcmask 15360  }
   0x6   :  { %v39_v11 = vpack.c.bf16 %v29_v10, %v28_v9  ;;  %v23_v13 = vld [vmem:[%s593_s0 + $0x28] sm:$0xff]  ;;  %v30_v15 = vld [vmem:[%s593_s0 + $0x60] sm:$0xff]  ;;  %v134_v18 = vld [vmem:[%s595_s2 + $0x78] sm:$0xff] }
   0x7   :  { %271 = vmatmul.msk.bf16.vlgmr.msra.gmra.mxu0 %vm45_vm0, %v34_v5  ;;  %v36_v14 = vpack.c.bf16 %v23_v13, %v22_v12  ;;  %v31_v16 = vld [vmem:[%s593_s0 + $0x68] sm:$0xff]  ;;  %135 = vmatpush.msra.mxu1 %v134_v18  ;;  %v133_v19 = vld [vmem:[%s595_s2 + $0x70] sm:$0xff]  ;;  %v131_v21 = vld [vmem:[%s595_s2 + $0x60] sm:$0xff] }
   0x8   :  { %276 = vmatmul.msk.bf16.vlgmr.msra.gmra.mxu3 %vm45_vm0, %v39_v11  ;;  %v40_v17 = vpack.c.bf16 %v31_v16, %v30_v15  ;;  %327 = vmatpush.msra.mxu2 %v134_v18  ;;  %v132_v20 = vld [vmem:[%s595_s2 + $0x68] sm:$0xff]  ;;  %v130_v22 = vld [vmem:[%s595_s2 + $0x58] sm:$0xff]  ;;  %v129_v23 = vld [vmem:[%s595_s2 + $0x50] sm:$0xff] }
   0x9   :  { %136 = vmatpush.msra.mxu1 %v133_v19  ;;  %328 = vmatpush.msrb.mxu3 %v134_v18  ;;  %v24_v24 = vld [vmem:[%s593_s0 + $0x30] sm:$0xff]  ;;  %v25_v25 = vld [vmem:[%s593_s0 + $0x38] sm:$0xff]  ;;  %v128_v26 = vld [vmem:[%s595_s2 + $0x48] sm:$0xff] }
   0xa   :  { %329 = vmatpush.msra.mxu2 %v133_v19  ;;  %v32_v27 = vld [vmem:[%s593_s0 + $0x70] sm:$0xff]  ;;  %v33_v28 = vld [vmem:[%s593_s0 + $0x78] sm:$0xff]  ;;  %v37_v29 = vpack.c.bf16 %v25_v25, %v24_v24  ;;  %v127_v30 = vld [vmem:[%s595_s2 + $0x40] sm:$0xff] }
   0xb   :  { %137 = vmatpush.msra.mxu1 %v132_v20  ;;  %330 = vmatpush.msrb.mxu3 %v133_v19  ;;  %v41_v31 = vpack.c.bf16 %v33_v28, %v32_v27  ;;  %v126_v32 = vld [vmem:[%s595_s2 + $0x38] sm:$0xff]  ;;  %v125_v33 = vld [vmem:[%s595_s2 + $0x30] sm:$0xff]  ;;  %v124_v34 = vld [vmem:[%s595_s2 + $0x28] sm:$0xff] }
   0xc   :  { %331 = vmatpush.msra.mxu2 %v132_v20  ;;  %v123_v35 = vld [vmem:[%s595_s2 + $0x20] sm:$0xff]  ;;  %v122_v36 = vld [vmem:[%s595_s2 + $0x18] sm:$0xff]  ;;  %v121_v37 = vld [vmem:[%s595_s2 + $0x10] sm:$0xff] }
   0xd   :  { %138 = vmatpush.msra.mxu1 %v131_v21  ;;  %332 = vmatpush.msrb.mxu3 %v132_v20  ;;  %v26_v38 = vld [vmem:[%s593_s0 + $0x40] sm:$0xff]  ;;  %v27_v39 = vld [vmem:[%s593_s0 + $0x48] sm:$0xff] }
   0xe   :  { %333 = vmatpush.msra.mxu2 %v131_v21  ;;  %v120_v40 = vld [vmem:[%s595_s2 + $0x8] sm:$0xff]  ;;  %v38_v41 = vpack.c.bf16 %v27_v39, %v26_v38  ;;  %v119_v42 = vld [vmem:[%s595_s2] sm:$0xff]  ;;  %s388_s2 = smov [#allocation2]  }
   0xf   :  { %139 = vmatpush.msra.mxu1 %v130_v22  ;;  %334 = vmatpush.msrb.mxu3 %v131_v21  ;;  %s253_s27 = sshll.u32 %s388_s2, 4  ;;  %s254_s27 = int_to_ptr.vmem [resolvable:$true] %s253_s27 }
  0x10   :  { %335 = vmatpush.msra.mxu2 %v130_v22 }
  0x11   :  { %140 = vmatpush.msra.mxu1 %v129_v23  ;;  %336 = vmatpush.msrb.mxu3 %v130_v22 }
  0x12   :  { %337 = vmatpush.msra.mxu2 %v129_v23 }
  0x13   :  { %141 = vmatpush.msra.mxu1 %v128_v26  ;;  %338 = vmatpush.msrb.mxu3 %v129_v23 }
  0x14   :  { %339 = vmatpush.msra.mxu2 %v128_v26 }
  0x15   :  { %142 = vmatpush.msra.mxu1 %v127_v30  ;;  %340 = vmatpush.msrb.mxu3 %v128_v26 }
  0x16   :  { %341 = vmatpush.msra.mxu2 %v127_v30 }
  0x17   :  { %272 = vmatmul.msk.bf16.gmra.mxu0 %vm45_vm0, %v35_v8  ;;  %143 = vmatpush.msra.mxu1 %v126_v32 }
  0x18   :  { %277 = vmatmul.msk.bf16.gmra.mxu3 %vm45_vm0, %v40_v17  ;;  %343 = vmatpush.msra.mxu2 %v126_v32 }
  0x19   :  { %144 = vmatpush.msra.mxu1 %v125_v33  ;;  %342 = vmatpush.msrb.mxu3 %v127_v30 }
  0x1a   :  { %345 = vmatpush.msra.mxu2 %v125_v33 }
  0x1b   :  { %145 = vmatpush.msra.mxu1 %v124_v34  ;;  %344 = vmatpush.msrb.mxu3 %v126_v32 }
  0x1c   :  { %347 = vmatpush.msra.mxu2 %v124_v34 }
  0x1d   :  { %146 = vmatpush.msra.mxu1 %v123_v35  ;;  %346 = vmatpush.msrb.mxu3 %v125_v33 }
  0x1e   :  { %349 = vmatpush.msra.mxu2 %v123_v35 }
  0x1f   :  { %147 = vmatpush.msra.mxu1 %v122_v36  ;;  %348 = vmatpush.msrb.mxu3 %v124_v34 }
  0x20   :  { %351 = vmatpush.msra.mxu2 %v122_v36 }
  0x21   :  { %148 = vmatpush.msra.mxu1 %v121_v37  ;;  %350 = vmatpush.msrb.mxu3 %v123_v35 }
  0x22   :  { %353 = vmatpush.msra.mxu2 %v121_v37 }
  0x23   :  { %149 = vmatpush.msra.mxu1 %v120_v40  ;;  %352 = vmatpush.msrb.mxu3 %v122_v36 }
  0x24   :  { %355 = vmatpush.msra.mxu2 %v120_v40 }
  0x25   :  { %354 = vmatpush.msrb.mxu3 %v121_v37  ;;  %150 = vmatpush.msra.mxu1 %v119_v42 }
  0x26   :  { %357 = vmatpush.msra.mxu2 %v119_v42 }
  0x27   :  { %273 = vmatmul.msk.bf16.gmra.mxu0 %vm45_vm0, %v36_v14  ;;  %356 = vmatpush.msrb.mxu3 %v120_v40 }
  0x28   :  { %278 = vmatmul.msk.bf16.gmra.mxu3 %vm45_vm0, %v41_v31 }
  0x29   :  { %358 = vmatpush.msrb.mxu3 %v119_v42 }
  0x37   :  { %274 = vmatmul.msk.bf16.gmra.mxu0 %vm45_vm0, %v37_v29 }
  0x47   :  { %275 = vmatmul.msk.bf16.gmra.mxu0 %vm45_vm0, %v38_v41 }
  0x84   :  { %v79_v43 = vpop.f32.mrf.mxu0 }
  0x85   :  { %151 = vmatmul.f32.vlgmr.msra.gmra.mxu1 %v79_v43 }
  0x8b   :  { %v104_v48 = vpop.f32.mrf.mxu3 }
  0x8c   :  { %v81_v44 = vpop.f32.mrf.mxu0 }
  0x8d   :  { %v282_v45 = vpack.c.bf16 %v81_v44, %v79_v43  ;;  %154 = vmatmul.f32.gmra.mxu1 %v81_v44 }
  0x8f   :  { %283 = vst [vmem:[#allocation2] sm:$0xff] %v282_v45  }
  0x93   :  { %v106_v51 = vpop.f32.mrf.mxu3 }
  0x94   :  { %v84_v46 = vpop.f32.mrf.mxu0  ;;  %v307_v52 = vpack.c.bf16 %v106_v51, %v104_v48 }
  0x95   :  { %157 = vmatmul.f32.gmra.mxu1 %v84_v46 }
  0x96   :  { %323 = vst [vmem:[#allocation2 + $0x28] sm:$0xff] %v307_v52  }
  0x9b   :  { %v109_v54 = vpop.f32.mrf.mxu3 }
  0x9c   :  { %v86_v47 = vpop.f32.mrf.mxu0 }
  0x9d   :  { %v287_v49 = vpack.c.bf16 %v86_v47, %v84_v46  ;;  %160 = vmatmul.f32.gmra.mxu1 %v86_v47 }
  0x9f   :  { %319 = vst [vmem:[#allocation2 + $0x8] sm:$0xff] %v287_v49  }
  0xa3   :  { %v111_v57 = vpop.f32.mrf.mxu3 }
  0xa4   :  { %v89_v50 = vpop.f32.mrf.mxu0  ;;  %v312_v58 = vpack.c.bf16 %v111_v57, %v109_v54 }
  0xa5   :  { %163 = vmatmul.f32.gmra.mxu1 %v89_v50 }
  0xa6   :  { %324 = vst [vmem:[#allocation2 + $0x30] sm:$0xff] %v312_v58  }
  0xab   :  { %v114_v60 = vpop.f32.mrf.mxu3 }
  0xac   :  { %v91_v53 = vpop.f32.mrf.mxu0  ;;  %193 = vmatmul.f32.vlgmr.msrb.gmra.mxu3 %v114_v60 }
  0xad   :  { %v292_v55 = vpack.c.bf16 %v91_v53, %v89_v50  ;;  %166 = vmatmul.f32.gmra.mxu1 %v91_v53 }
  0xaf   :  { %320 = vst [vmem:[#allocation2 + $0x10] sm:$0xff] %v292_v55  }
  0xb3   :  { %v116_v63 = vpop.f32.mrf.mxu3 }
  0xb4   :  { %v94_v56 = vpop.f32.mrf.mxu0  ;;  %v317_v0 = vpack.c.bf16 %v116_v63, %v114_v60  ;;  %196 = vmatmul.f32.gmra.mxu3 %v116_v63 }
  0xb5   :  { %169 = vmatmul.f32.gmra.mxu1 %v94_v56 }
  0xb6   :  { %325 = vst [vmem:[#allocation2 + $0x38] sm:$0xff] %v317_v0  }
  0xbc   :  { %v96_v59 = vpop.f32.mrf.mxu0 }
  0xbd   :  { %v297_v61 = vpack.c.bf16 %v96_v59, %v94_v56  ;;  %172 = vmatmul.f32.vlgmr.msra.gmra.mxu2 %v96_v59 }
  0xbf   :  { %321 = vst [vmem:[#allocation2 + $0x18] sm:$0xff] %v297_v61  }
  0xc4   :  { %v99_v62 = vpop.f32.mrf.mxu0 }
  0xc5   :  { %175 = vmatmul.f32.gmra.mxu2 %v99_v62 }
  0xcc   :  { %v101_v1 = vpop.f32.mrf.mxu0 }
  0xcd   :  { %v302_v2 = vpack.c.bf16 %v101_v1, %v99_v62  ;;  %178 = vmatmul.f32.gmra.mxu2 %v101_v1 }
  0xcf   :  { %322 = vst [vmem:[#allocation2 + $0x20] sm:$0xff] %v302_v2  }
  0xd0   :  { %261 = dma.vmem_to_hbm [thread:$0]  %s254_s27, 1024, %s256_s30, [#allocation3], %s389_s5, %s389_s5, %s390_s6  }
  0xd5   :  { %181 = vmatmul.f32.gmra.mxu2 %v104_v48 }
  0xdd   :  { %184 = vmatmul.f32.gmra.mxu2 %v106_v51 }
  0xe5   :  { %187 = vmatmul.f32.gmra.mxu2 %v109_v54 }
  0xed   :  { %190 = vmatmul.f32.gmra.mxu2 %v111_v57 }
 0x102   :  { %v152_v3 = vpop.f32.mrf.mxu1 }
 0x103   :  { %201 = vst.msk [vmem:[%s597_s4] sm:$0xff] %vm200_vm1, %v152_v3 }
 0x10a   :  { %v155_v4 = vpop.f32.mrf.mxu1 }
 0x10b   :  { %202 = vst.msk [vmem:[%s597_s4 + $0x8] sm:$0xff] %vm200_vm1, %v155_v4 }
 0x112   :  { %v158_v5 = vpop.f32.mrf.mxu1 }
 0x113   :  { %203 = vst.msk [vmem:[%s597_s4 + $0x10] sm:$0xff] %vm200_vm1, %v158_v5 }
 0x11a   :  { %v161_v6 = vpop.f32.mrf.mxu1 }
 0x11b   :  { %204 = vst.msk [vmem:[%s597_s4 + $0x18] sm:$0xff] %vm200_vm1, %v161_v6 }
 0x122   :  { %v164_v7 = vpop.f32.mrf.mxu1 }
 0x123   :  { %205 = vst.msk [vmem:[%s597_s4 + $0x20] sm:$0xff] %vm200_vm1, %v164_v7 }
 0x12a   :  { %v167_v8 = vpop.f32.mrf.mxu1 }
 0x12b   :  { %206 = vst.msk [vmem:[%s597_s4 + $0x28] sm:$0xff] %vm200_vm1, %v167_v8 }
 0x12f   :  { %v194_v11 = vpop.f32.mrf.mxu3 }
 0x130   :  { %215 = vst.msk [vmem:[%s597_s4 + $0x70] sm:$0xff] %vm200_vm1, %v194_v11 }
 0x132   :  { %v170_v9 = vpop.f32.mrf.mxu1 }
 0x133   :  { %207 = vst.msk [vmem:[%s597_s4 + $0x30] sm:$0xff] %vm200_vm1, %v170_v9 }
 0x137   :  { %v197_v13 = vpop.f32.mrf.mxu3 }
 0x138   :  { %216 = vst.msk [vmem:[%s597_s4 + $0x78] sm:$0xff] %vm200_vm1, %v197_v13 }
 0x140   :  { %v173_v10 = vpop.f32.mrf.mxu2 }
 0x141   :  { %208 = vst.msk [vmem:[%s597_s4 + $0x38] sm:$0xff] %vm200_vm1, %v173_v10 }
 0x148   :  { %v176_v12 = vpop.f32.mrf.mxu2 }
 0x149   :  { %209 = vst.msk [vmem:[%s597_s4 + $0x40] sm:$0xff] %vm200_vm1, %v176_v12 }
 0x150   :  { %v179_v14 = vpop.f32.mrf.mxu2 }
 0x151   :  { %210 = vst.msk [vmem:[%s597_s4 + $0x48] sm:$0xff] %vm200_vm1, %v179_v14 }
 0x158   :  { %v182_v15 = vpop.f32.mrf.mxu2 }
 0x159   :  { %211 = vst.msk [vmem:[%s597_s4 + $0x50] sm:$0xff] %vm200_vm1, %v182_v15 }
 0x160   :  { %v185_v16 = vpop.f32.mrf.mxu2 }
 0x161   :  { %212 = vst.msk [vmem:[%s597_s4 + $0x58] sm:$0xff] %vm200_vm1, %v185_v16 }
 0x168   :  { %v188_v17 = vpop.f32.mrf.mxu2 }
 0x169   :  { %213 = vst.msk [vmem:[%s597_s4 + $0x60] sm:$0xff] %vm200_vm1, %v188_v17 }
 0x170   :  { %v191_v18 = vpop.f32.mrf.mxu2 }
 0x171   :  { %214 = vst.msk [vmem:[%s597_s4 + $0x68] sm:$0xff] %vm200_vm1, %v191_v18 }
 0x172   :  { %386 = dma.done.wait [#allocation3], 1024  }
 0x173   :  { %387 = vsyncadd [#allocation3], 4294966272 }
 0x174   :  { %270 = vsyncpa [#allocation3], 1 }

</bundles_post_ra>
